<compile_context>
chip_gen: v6e
topology: v6e:2x2x1
jax: 0.10.0
libtpu: 0.0.40
codegen_flags: <defaults>
</compile_context>

<pallas_src>
import functools

import jax
import jax.numpy as jnp
from jax.experimental import pallas as pl
from jax.experimental.pallas import tpu as pltpu


def _round_up(v, m):
    return (v + m - 1) // m * m


# ----------------------------- fused Pallas kernel --------------------------

def _fused_forward_kernel(x_ref, wpk_ref, aux_ref, out_ref, *scratch_refs,
                          cfg, w_offs, fc_in):
    """Forward pass for ONE batch element (grid is over batch).

    x_ref   : (L, 2*cin0)  packed input rows [re chans | im chans]   (f32)
    wpk_ref : (R, W)       all conv weights, row-packed per layer     (bf16)
    aux_ref : (8, W)       rows 0..4 packed biases, 5 fc weight, 6 fc bias (f32)
    out_ref : (1, 1)       fc output for this batch element
    scratch_refs : 4 VMEM buffers holding the outputs of layers 1..4
                   (exact activation shapes, (lout_l, 2*cout_l), f32)
    """
    src_refs = (x_ref,) + scratch_refs          # input of layer l
    dst_refs = scratch_refs + (None,)           # output of layer l

    for li, (cin, cout, k, s, lout) in enumerate(cfg):
        src = src_refs[li]

        # In-kernel im2col: k static (strided) row slices of the resident ref,
        # concatenated along lanes -> X_col (lout, k*2cin).  No iotas, no
        # selection matmuls, no O(batch^2) intermediates.
        taps = []
        for t in range(k):
            if s > 1:
                taps.append(src[pl.ds(t, lout, stride=s), :])
            else:
                taps.append(src[pl.ds(t, lout), :])
        xcol = jnp.concatenate(taps, axis=1).astype(jnp.bfloat16)

        # One MXU dot per layer against the host-packed complex weight block.
        w = wpk_ref[pl.ds(w_offs[li], k * 2 * cin), pl.ds(0, 2 * cout)]
        y = jnp.dot(xcol, w, preferred_element_type=jnp.float32)

        # Packed complex bias [br-bi | br+bi] + split ReLU, in f32.
        y = y + aux_ref[pl.ds(li, 1), pl.ds(0, 2 * cout)]
        act = jnp.maximum(y, 0.0)

        if dst_refs[li] is not None:
            dst_refs[li][...] = act             # stays resident in VMEM
        else:
            # Final conv length is 1 -> act is (1, 2*8C) == torch's
            # cat((x.real, x.imag), dim=1) layout.  Fuse nn.Linear(.,1) as a
            # VPU multiply + lane reduction (f32).
            fcw = aux_ref[pl.ds(5, 1), pl.ds(0, fc_in)]
            fcb = aux_ref[pl.ds(6, 1), pl.ds(0, 1)]
            out_ref[...] = jnp.sum(act * fcw, axis=1, keepdims=True) + fcb


# ----------------------------- wrapper / glue --------------------------------

def _pack_conv_weight(p):
    """PyTorch-layout complex conv params -> fused im2col matmul form."""
    cout, cin, k = p["wr"].shape
    wr = jnp.transpose(p["wr"], (2, 1, 0))            # (k, cin, cout)
    wi = jnp.transpose(p["wi"], (2, 1, 0))
    w = jnp.concatenate(
        [jnp.concatenate([wr, wi], axis=2),            # real-input rows
         jnp.concatenate([-wi, wr], axis=2)],          # imag-input rows
        axis=1)                                        # (k, 2cin, 2cout)
    w = w.reshape(k * 2 * cin, 2 * cout)               # tap-major rows
    b = jnp.concatenate([p["br"] - p["bi"], p["br"] + p["bi"]])   # (2cout,)
    return w, b


def forward(params, x):
    """x: complex64 (N, 1, L) -> real float32 (N, 1)."""
    xr = jnp.real(x).astype(jnp.float32)
    xi = jnp.imag(x).astype(jnp.float32)
    N, cin0, L = xr.shape
    strides = (5, 2, 2, 1, 1)

    # Packed input (N, L, 2*cin0): per-row lanes are [real chans | imag chans].
    x0 = jnp.concatenate([jnp.transpose(xr, (0, 2, 1)),
                          jnp.transpose(xi, (0, 2, 1))], axis=-1)

    cfg, w_list, b_list = [], [], []
    lin = L
    for idx, s in enumerate(strides, start=1):
        p = params[f"conv{idx}"]
        cout, cin, k = p["wr"].shape
        lout = (lin - k) // s + 1
        w, b = _pack_conv_weight(p)
        w_list.append(w)
        b_list.append(b)
        cfg.append((cin, cout, k, s, lout))
        lin = lout
    if lin != 1:
        # The fused FC (and torch's fc in_features=2*8*C) require final length 1.
        raise ValueError(f"final conv length must be 1, got {lin} for L={L}")

    fc_w = params["fc"]["w"][:, 0]
    fc_b = params["fc"]["b"]
    fc_in = fc_w.shape[0]

    # Lane-dense aux block: rows 0..4 = packed conv biases, 5 = fc weight,
    # 6 = fc bias (stays f32 for bias-add / ReLU / FC reduction).
    width = max([fc_in] + [w.shape[1] for w in w_list])
    aux = jnp.zeros((8, width), jnp.float32)
    for i, b in enumerate(b_list):
        aux = aux.at[i, : b.shape[0]].set(b)
    aux = aux.at[5, :fc_in].set(fc_w)
    aux = aux.at[6, 0].set(fc_b[0])

    # One packed conv-weight block in bf16; per-layer row offsets padded to a
    # multiple of 16 so bf16 sublane packing stays tile-aligned.
    w_offs, rows = [], 0
    for w in w_list:
        w_offs.append(rows)
        rows += _round_up(w.shape[0], 16)
    wpk = jnp.zeros((rows, width), jnp.float32)
    for off, w in zip(w_offs, w_list):
        wpk = wpk.at[off: off + w.shape[0], : w.shape[1]].set(w)
    wpk = wpk.astype(jnp.bfloat16)

    # VMEM scratch for the outputs of layers 1..4 (exact shapes, ~KBs).
    scratch_shapes = [pltpu.VMEM((c[4], 2 * c[1]), jnp.float32) for c in cfg[:-1]]

    kernel = functools.partial(_fused_forward_kernel, cfg=tuple(cfg),
                               w_offs=tuple(w_offs), fc_in=fc_in)

    out = pl.pallas_call(
        kernel,
        out_shape=jax.ShapeDtypeStruct((N, 1, 1), jnp.float32),
        grid=(N,),
        in_specs=[
            # per-batch pipelined block; trailing dims are full-extent
            pl.BlockSpec((None, L, 2 * cin0), lambda n: (n, 0, 0)),
            # constant blocks (index map ignores n -> fetched once)
            pl.BlockSpec(wpk.shape, lambda n: (0, 0)),
            pl.BlockSpec(aux.shape, lambda n: (0, 0)),
        ],
        # TODO(synk): for large N emit a lane-dense (1, N_pad) output instead
        # of per-row (1,1) blocks; irrelevant at N=2.
        out_specs=pl.BlockSpec((None, 1, 1), lambda n: (n, 0, 0)),
        scratch_shapes=scratch_shapes,
        compiler_params=pltpu.CompilerParams(
            dimension_semantics=("parallel",)),
    )(x0, wpk, aux)
    return out.reshape(N, 1)


# ----------------------------- parameters ------------------------------------

def init_params(key, base_channels):
    C = base_channels
    specs = [(1, C, 11), (C, 2 * C, 3), (2 * C, 4 * C, 3),
             (4 * C, 8 * C, 3), (8 * C, 8 * C, 3)]
    params = {}
    for idx, (cin, cout, k) in enumerate(specs, start=1):
        key, k1, k2, k3, k4 = jax.random.split(key, 5)
        s = 1.0 / jnp.sqrt(cin * k)
        params[f"conv{idx}"] = dict(
            wr=jax.random.uniform(k1, (cout, cin, k), jnp.float32, -s, s),
            wi=jax.random.uniform(k2, (cout, cin, k), jnp.float32, -s, s),
            br=jax.random.uniform(k3, (cout,), jnp.float32, -s, s),
            bi=jax.random.uniform(k4, (cout,), jnp.float32, -s, s),
        )
    key, k1, k2 = jax.random.split(key, 3)
    fin = 2 * 8 * C
    s = 1.0 / jnp.sqrt(fin)
    params["fc"] = dict(
        w=jax.random.uniform(k1, (fin, 1), jnp.float32, -s, s),
        b=jax.random.uniform(k2, (1,), jnp.float32, -s, s),
    )
    return params


# ----------------------------- reference (plain JAX, f32) --------------------

def _ref_forward(params, x):
    xr = jnp.real(x).astype(jnp.float32)
    xi = jnp.imag(x).astype(jnp.float32)
    strides = [5, 2, 2, 1, 1]
    for idx, s in enumerate(strides, start=1):
        p = params[f"conv{idx}"]

        def conv(z, w, b, stride=s):
            y = jax.lax.conv_general_dilated(
                z, w, (stride,), "VALID",
                dimension_numbers=("NCH", "OIH", "NCH"))
            return y + b[None, :, None]

        yr = conv(xr, p["wr"], p["br"]) - conv(xi, p["wi"], p["bi"])
        yi = conv(xi, p["wr"], p["br"]) + conv(xr, p["wi"], p["bi"])
        xr = jnp.maximum(yr, 0.0)
        xi = jnp.maximum(yi, 0.0)
    N = xr.shape[0]
    feat = jnp.concatenate([xr.reshape(N, -1), xi.reshape(N, -1)], axis=1)
    return feat @ params["fc"]["w"] + params["fc"]["b"][None, :]


# ----------------------------- main -------------------------------------------

if __name__ == "__main__":
    base_channels = 4
    N, L = 2, 121          # L=121 -> 23 -> 11 -> 5 -> 3 -> 1 (matches fc in_features)

    key = jax.random.PRNGKey(0)
    key, kx1, kx2, kp = jax.random.split(key, 4)
    x = (jax.random.normal(kx1, (N, 1, L), jnp.float32)
         + 1j * jax.random.normal(kx2, (N, 1, L), jnp.float32)).astype(jnp.complex64)
    params = init_params(kp, base_channels)

    out = jax.block_until_ready(jax.jit(forward)(params, x))
    assert out.shape == (N, 1), out.shape

    ref = jax.block_until_ready(_ref_forward(params, x))
    # Conv dots run in bf16 (f32 accumulation) -> allow bf16-level mismatch
    # against the pure-f32 reference.
    err = float(jnp.max(jnp.abs(out - ref)))
    scale = float(jnp.max(jnp.abs(ref)))
    assert err <= 2e-2 + 2e-2 * scale, (err, scale, out, ref)

    print("KERNEL_OK")
</pallas_src>

<mosaic_0001>
module attributes {stable_mosaic.version = 11 : i64} {
  func.func @_fused_forward_kernel(%arg0: i32, %arg1: memref<1x121x2xf32, #tpu.memory_space<vmem>>, %arg2: memref<400x64xbf16, #tpu.memory_space<vmem>>, %arg3: memref<8x64xf32, #tpu.memory_space<vmem>>, %arg4: memref<1x1x1xf32, #tpu.memory_space<vmem>>, %arg5: memref<23x8xf32, #tpu.memory_space<vmem>>, %arg6: memref<11x16xf32, #tpu.memory_space<vmem>>, %arg7: memref<5x32xf32, #tpu.memory_space<vmem>>, %arg8: memref<3x64xf32, #tpu.memory_space<vmem>>) attributes {dimension_semantics = [#tpu.dimension_semantics<parallel>], iteration_bounds = array<i64: 2>, scalar_prefetch = 0 : i64, scratch_operands = 4 : i64, tpu.core_type = #tpu.core_type<tc>, window_params = [{transform_indices = @transform_0, window_bounds = array<i64: 1, 121, 2>}, {pipeline_mode = #tpu.pipeline_mode<synchronous>, transform_indices = @transform_1, window_bounds = array<i64: 400, 64>}, {pipeline_mode = #tpu.pipeline_mode<synchronous>, transform_indices = @transform_2, window_bounds = array<i64: 8, 64>}, {transform_indices = @transform_3, window_bounds = array<i64: 1, 1, 1>}]} {
    %c0 = arith.constant 0 : index
    %c0_0 = arith.constant 0 : index
    %c0_1 = arith.constant 0 : index
    %0 = tpu.strided_load %arg1[%c0, %c0_0, %c0_1] {strides = array<i32: 1, 5, 1>} : memref<1x121x2xf32, #tpu.memory_space<vmem>>, vector<1x23x2xf32>
    %1 = vector.shape_cast %0 : vector<1x23x2xf32> to vector<23x2xf32>
    %c0_2 = arith.constant 0 : index
    %c1 = arith.constant 1 : index
    %c0_3 = arith.constant 0 : index
    %2 = tpu.strided_load %arg1[%c0_2, %c1, %c0_3] {strides = array<i32: 1, 5, 1>} : memref<1x121x2xf32, #tpu.memory_space<vmem>>, vector<1x23x2xf32>
    %3 = vector.shape_cast %2 : vector<1x23x2xf32> to vector<23x2xf32>
    %c0_4 = arith.constant 0 : index
    %c2 = arith.constant 2 : index
    %c0_5 = arith.constant 0 : index
    %4 = tpu.strided_load %arg1[%c0_4, %c2, %c0_5] {strides = array<i32: 1, 5, 1>} : memref<1x121x2xf32, #tpu.memory_space<vmem>>, vector<1x23x2xf32>
    %5 = vector.shape_cast %4 : vector<1x23x2xf32> to vector<23x2xf32>
    %c0_6 = arith.constant 0 : index
    %c3 = arith.constant 3 : index
    %c0_7 = arith.constant 0 : index
    %6 = tpu.strided_load %arg1[%c0_6, %c3, %c0_7] {strides = array<i32: 1, 5, 1>} : memref<1x121x2xf32, #tpu.memory_space<vmem>>, vector<1x23x2xf32>
    %7 = vector.shape_cast %6 : vector<1x23x2xf32> to vector<23x2xf32>
    %c0_8 = arith.constant 0 : index
    %c4 = arith.constant 4 : index
    %c0_9 = arith.constant 0 : index
    %8 = tpu.strided_load %arg1[%c0_8, %c4, %c0_9] {strides = array<i32: 1, 5, 1>} : memref<1x121x2xf32, #tpu.memory_space<vmem>>, vector<1x23x2xf32>
    %9 = vector.shape_cast %8 : vector<1x23x2xf32> to vector<23x2xf32>
    %c0_10 = arith.constant 0 : index
    %c5 = arith.constant 5 : index
    %c0_11 = arith.constant 0 : index
    %10 = tpu.strided_load %arg1[%c0_10, %c5, %c0_11] {strides = array<i32: 1, 5, 1>} : memref<1x121x2xf32, #tpu.memory_space<vmem>>, vector<1x23x2xf32>
    %11 = vector.shape_cast %10 : vector<1x23x2xf32> to vector<23x2xf32>
    %c0_12 = arith.constant 0 : index
    %c6 = arith.constant 6 : index
    %c0_13 = arith.constant 0 : index
    %12 = tpu.strided_load %arg1[%c0_12, %c6, %c0_13] {strides = array<i32: 1, 5, 1>} : memref<1x121x2xf32, #tpu.memory_space<vmem>>, vector<1x23x2xf32>
    %13 = vector.shape_cast %12 : vector<1x23x2xf32> to vector<23x2xf32>
    %c0_14 = arith.constant 0 : index
    %c7 = arith.constant 7 : index
    %c0_15 = arith.constant 0 : index
    %14 = tpu.strided_load %arg1[%c0_14, %c7, %c0_15] {strides = array<i32: 1, 5, 1>} : memref<1x121x2xf32, #tpu.memory_space<vmem>>, vector<1x23x2xf32>
    %15 = vector.shape_cast %14 : vector<1x23x2xf32> to vector<23x2xf32>
    %c0_16 = arith.constant 0 : index
    %c8 = arith.constant 8 : index
    %c0_17 = arith.constant 0 : index
    %16 = tpu.strided_load %arg1[%c0_16, %c8, %c0_17] {strides = array<i32: 1, 5, 1>} : memref<1x121x2xf32, #tpu.memory_space<vmem>>, vector<1x23x2xf32>
    %17 = vector.shape_cast %16 : vector<1x23x2xf32> to vector<23x2xf32>
    %c0_18 = arith.constant 0 : index
    %c9 = arith.constant 9 : index
    %c0_19 = arith.constant 0 : index
    %18 = tpu.strided_load %arg1[%c0_18, %c9, %c0_19] {strides = array<i32: 1, 5, 1>} : memref<1x121x2xf32, #tpu.memory_space<vmem>>, vector<1x23x2xf32>
    %19 = vector.shape_cast %18 : vector<1x23x2xf32> to vector<23x2xf32>
    %c0_20 = arith.constant 0 : index
    %c10 = arith.constant 10 : index
    %c0_21 = arith.constant 0 : index
    %20 = tpu.strided_load %arg1[%c0_20, %c10, %c0_21] {strides = array<i32: 1, 5, 1>} : memref<1x121x2xf32, #tpu.memory_space<vmem>>, vector<1x23x2xf32>
    %21 = vector.shape_cast %20 : vector<1x23x2xf32> to vector<23x2xf32>
    %22 = tpu.concatenate %1, %3, %5, %7, %9, %11, %13, %15, %17, %19, %21 in 1 : vector<23x2xf32>, vector<23x2xf32>, vector<23x2xf32>, vector<23x2xf32>, vector<23x2xf32>, vector<23x2xf32>, vector<23x2xf32>, vector<23x2xf32>, vector<23x2xf32>, vector<23x2xf32>, vector<23x2xf32> -> vector<23x22xf32>
    %23 = arith.truncf %22 : vector<23x22xf32> to vector<23x22xbf16>
    %c0_22 = arith.constant 0 : index
    %c0_23 = arith.constant 0 : index
    %24 = vector.load %arg2[%c0_22, %c0_23] : memref<400x64xbf16, #tpu.memory_space<vmem>>, vector<22x8xbf16>
    %cst = arith.constant dense<0.000000e+00> : vector<23x8xf32>
    %25 = tpu.matmul %23, %24, %cst {dimension_numbers = #tpu.dot_dimension_numbers<[1], [0], [0], [1], [0, 0, 1, 1], [], []>} : vector<23x22xbf16>, vector<22x8xbf16>, vector<23x8xf32> -> vector<23x8xf32>
    %c0_24 = arith.constant 0 : index
    %c0_25 = arith.constant 0 : index
    %26 = vector.load %arg3[%c0_24, %c0_25] : memref<8x64xf32, #tpu.memory_space<vmem>>, vector<1x8xf32>
    %27 = vector.broadcast %26 : vector<1x8xf32> to vector<23x8xf32>
    %28 = arith.addf %25, %27 : vector<23x8xf32>
    %cst_26 = arith.constant 0.000000e+00 : f32
    %29 = vector.broadcast %cst_26 : f32 to vector<23x8xf32>
    %30 = arith.maximumf %28, %29 : vector<23x8xf32>
    %c0_27 = arith.constant 0 : index
    %c0_28 = arith.constant 0 : index
    %31 = vector.load %arg5[%c0_27, %c0_28] : memref<23x8xf32, #tpu.memory_space<vmem>>, vector<23x8xf32>
    tpu.vector_store %arg5[%c0_27, %c0_28], %30 {strides = array<i32>} : memref<23x8xf32, #tpu.memory_space<vmem>>, vector<23x8xf32>,
    %c0_29 = arith.constant 0 : index
    %c0_30 = arith.constant 0 : index
    %32 = tpu.strided_load %arg5[%c0_29, %c0_30] {strides = array<i32: 2, 1>} : memref<23x8xf32, #tpu.memory_space<vmem>>, vector<11x8xf32>
    %c1_31 = arith.constant 1 : index
    %c0_32 = arith.constant 0 : index
    %33 = tpu.strided_load %arg5[%c1_31, %c0_32] {strides = array<i32: 2, 1>} : memref<23x8xf32, #tpu.memory_space<vmem>>, vector<11x8xf32>
    %c2_33 = arith.constant 2 : index
    %c0_34 = arith.constant 0 : index
    %34 = tpu.strided_load %arg5[%c2_33, %c0_34] {strides = array<i32: 2, 1>} : memref<23x8xf32, #tpu.memory_space<vmem>>, vector<11x8xf32>
    %35 = tpu.concatenate %32, %33, %34 in 1 : vector<11x8xf32>, vector<11x8xf32>, vector<11x8xf32> -> vector<11x24xf32>
    %36 = arith.truncf %35 : vector<11x24xf32> to vector<11x24xbf16>
    %c32 = arith.constant 32 : index
    %c0_35 = arith.constant 0 : index
    %37 = vector.load %arg2[%c32, %c0_35] : memref<400x64xbf16, #tpu.memory_space<vmem>>, vector<24x16xbf16>
    %cst_36 = arith.constant dense<0.000000e+00> : vector<11x16xf32>
    %38 = tpu.matmul %36, %37, %cst_36 {dimension_numbers = #tpu.dot_dimension_numbers<[1], [0], [0], [1], [0, 0, 1, 1], [], []>} : vector<11x24xbf16>, vector<24x16xbf16>, vector<11x16xf32> -> vector<11x16xf32>
    %c1_37 = arith.constant 1 : index
    %c0_38 = arith.constant 0 : index
    %39 = vector.load %arg3[%c1_37, %c0_38] : memref<8x64xf32, #tpu.memory_space<vmem>>, vector<1x16xf32>
    %40 = vector.broadcast %39 : vector<1x16xf32> to vector<11x16xf32>
    %41 = arith.addf %38, %40 : vector<11x16xf32>
    %cst_39 = arith.constant 0.000000e+00 : f32
    %42 = vector.broadcast %cst_39 : f32 to vector<11x16xf32>
    %43 = arith.maximumf %41, %42 : vector<11x16xf32>
    %c0_40 = arith.constant 0 : index
    %c0_41 = arith.constant 0 : index
    %44 = vector.load %arg6[%c0_40, %c0_41] : memref<11x16xf32, #tpu.memory_space<vmem>>, vector<11x16xf32>
    tpu.vector_store %arg6[%c0_40, %c0_41], %43 {strides = array<i32>} : memref<11x16xf32, #tpu.memory_space<vmem>>, vector<11x16xf32>,
    %c0_42 = arith.constant 0 : index
    %c0_43 = arith.constant 0 : index
    %45 = tpu.strided_load %arg6[%c0_42, %c0_43] {strides = array<i32: 2, 1>} : memref<11x16xf32, #tpu.memory_space<vmem>>, vector<5x16xf32>
    %c1_44 = arith.constant 1 : index
    %c0_45 = arith.constant 0 : index
    %46 = tpu.strided_load %arg6[%c1_44, %c0_45] {strides = array<i32: 2, 1>} : memref<11x16xf32, #tpu.memory_space<vmem>>, vector<5x16xf32>
    %c2_46 = arith.constant 2 : index
    %c0_47 = arith.constant 0 : index
    %47 = tpu.strided_load %arg6[%c2_46, %c0_47] {strides = array<i32: 2, 1>} : memref<11x16xf32, #tpu.memory_space<vmem>>, vector<5x16xf32>
    %48 = tpu.concatenate %45, %46, %47 in 1 : vector<5x16xf32>, vector<5x16xf32>, vector<5x16xf32> -> vector<5x48xf32>
    %49 = arith.truncf %48 : vector<5x48xf32> to vector<5x48xbf16>
    %c64 = arith.constant 64 : index
    %c0_48 = arith.constant 0 : index
    %50 = vector.load %arg2[%c64, %c0_48] : memref<400x64xbf16, #tpu.memory_space<vmem>>, vector<48x32xbf16>
    %cst_49 = arith.constant dense<0.000000e+00> : vector<5x32xf32>
    %51 = tpu.matmul %49, %50, %cst_49 {dimension_numbers = #tpu.dot_dimension_numbers<[1], [0], [0], [1], [0, 0, 1, 1], [], []>} : vector<5x48xbf16>, vector<48x32xbf16>, vector<5x32xf32> -> vector<5x32xf32>
    %c2_50 = arith.constant 2 : index
    %c0_51 = arith.constant 0 : index
    %52 = vector.load %arg3[%c2_50, %c0_51] : memref<8x64xf32, #tpu.memory_space<vmem>>, vector<1x32xf32>
    %53 = vector.broadcast %52 : vector<1x32xf32> to vector<5x32xf32>
    %54 = arith.addf %51, %53 : vector<5x32xf32>
    %cst_52 = arith.constant 0.000000e+00 : f32
    %55 = vector.broadcast %cst_52 : f32 to vector<5x32xf32>
    %56 = arith.maximumf %54, %55 : vector<5x32xf32>
    %c0_53 = arith.constant 0 : index
    %c0_54 = arith.constant 0 : index
    %57 = vector.load %arg7[%c0_53, %c0_54] : memref<5x32xf32, #tpu.memory_space<vmem>>, vector<5x32xf32>
    tpu.vector_store %arg7[%c0_53, %c0_54], %56 {strides = array<i32>} : memref<5x32xf32, #tpu.memory_space<vmem>>, vector<5x32xf32>,
    %c0_55 = arith.constant 0 : index
    %c0_56 = arith.constant 0 : index
    %58 = vector.load %arg7[%c0_55, %c0_56] : memref<5x32xf32, #tpu.memory_space<vmem>>, vector<3x32xf32>
    %c1_57 = arith.constant 1 : index
    %c0_58 = arith.constant 0 : index
    %59 = vector.load %arg7[%c1_57, %c0_58] : memref<5x32xf32, #tpu.memory_space<vmem>>, vector<3x32xf32>
    %c2_59 = arith.constant 2 : index
    %c0_60 = arith.constant 0 : index
    %60 = vector.load %arg7[%c2_59, %c0_60] : memref<5x32xf32, #tpu.memory_space<vmem>>, vector<3x32xf32>
    %61 = tpu.concatenate %58, %59, %60 in 1 : vector<3x32xf32>, vector<3x32xf32>, vector<3x32xf32> -> vector<3x96xf32>
    %62 = arith.truncf %61 : vector<3x96xf32> to vector<3x96xbf16>
    %c112 = arith.constant 112 : index
    %c0_61 = arith.constant 0 : index
    %63 = vector.load %arg2[%c112, %c0_61] : memref<400x64xbf16, #tpu.memory_space<vmem>>, vector<96x64xbf16>
    %cst_62 = arith.constant dense<0.000000e+00> : vector<3x64xf32>
    %64 = tpu.matmul %62, %63, %cst_62 {dimension_numbers = #tpu.dot_dimension_numbers<[1], [0], [0], [1], [0, 0, 1, 1], [], []>} : vector<3x96xbf16>, vector<96x64xbf16>, vector<3x64xf32> -> vector<3x64xf32>
    %c3_63 = arith.constant 3 : index
    %c0_64 = arith.constant 0 : index
    %65 = vector.load %arg3[%c3_63, %c0_64] : memref<8x64xf32, #tpu.memory_space<vmem>>, vector<1x64xf32>
    %66 = vector.broadcast %65 : vector<1x64xf32> to vector<3x64xf32>
    %67 = arith.addf %64, %66 : vector<3x64xf32>
    %cst_65 = arith.constant 0.000000e+00 : f32
    %68 = vector.broadcast %cst_65 : f32 to vector<3x64xf32>
    %69 = arith.maximumf %67, %68 : vector<3x64xf32>
    %c0_66 = arith.constant 0 : index
    %c0_67 = arith.constant 0 : index
    %70 = vector.load %arg8[%c0_66, %c0_67] : memref<3x64xf32, #tpu.memory_space<vmem>>, vector<3x64xf32>
    tpu.vector_store %arg8[%c0_66, %c0_67], %69 {strides = array<i32>} : memref<3x64xf32, #tpu.memory_space<vmem>>, vector<3x64xf32>,
    %c0_68 = arith.constant 0 : index
    %c0_69 = arith.constant 0 : index
    %71 = vector.load %arg8[%c0_68, %c0_69] : memref<3x64xf32, #tpu.memory_space<vmem>>, vector<1x64xf32>
    %c1_70 = arith.constant 1 : index
    %c0_71 = arith.constant 0 : index
    %72 = vector.load %arg8[%c1_70, %c0_71] : memref<3x64xf32, #tpu.memory_space<vmem>>, vector<1x64xf32>
    %c2_72 = arith.constant 2 : index
    %c0_73 = arith.constant 0 : index
    %73 = vector.load %arg8[%c2_72, %c0_73] : memref<3x64xf32, #tpu.memory_space<vmem>>, vector<1x64xf32>
    %74 = tpu.concatenate %71, %72, %73 in 1 : vector<1x64xf32>, vector<1x64xf32>, vector<1x64xf32> -> vector<1x192xf32>
    %75 = arith.truncf %74 : vector<1x192xf32> to vector<1x192xbf16>
    %c208 = arith.constant 208 : index
    %c0_74 = arith.constant 0 : index
    %76 = vector.load %arg2[%c208, %c0_74] : memref<400x64xbf16, #tpu.memory_space<vmem>>, vector<192x64xbf16>
    %cst_75 = arith.constant dense<0.000000e+00> : vector<1x64xf32>
    %77 = tpu.matmul %75, %76, %cst_75 {dimension_numbers = #tpu.dot_dimension_numbers<[1], [0], [0], [1], [0, 0, 1, 1], [], []>} : vector<1x192xbf16>, vector<192x64xbf16>, vector<1x64xf32> -> vector<1x64xf32>
    %c4_76 = arith.constant 4 : index
    %c0_77 = arith.constant 0 : index
    %78 = vector.load %arg3[%c4_76, %c0_77] : memref<8x64xf32, #tpu.memory_space<vmem>>, vector<1x64xf32>
    %79 = arith.addf %77, %78 : vector<1x64xf32>
    %cst_78 = arith.constant 0.000000e+00 : f32
    %80 = vector.broadcast %cst_78 : f32 to vector<1x64xf32>
    %81 = arith.maximumf %79, %80 : vector<1x64xf32>
    %c5_79 = arith.constant 5 : index
    %c0_80 = arith.constant 0 : index
    %82 = vector.load %arg3[%c5_79, %c0_80] : memref<8x64xf32, #tpu.memory_space<vmem>>, vector<1x64xf32>
    %c6_81 = arith.constant 6 : index
    %c0_82 = arith.constant 0 : index
    %83 = vector.load %arg3[%c6_81, %c0_82] : memref<8x64xf32, #tpu.memory_space<vmem>>, vector<1x1xf32>
    %84 = arith.mulf %81, %82 : vector<1x64xf32>
    %cst_83 = arith.constant dense<0.000000e+00> : vector<1xf32>
    %85 = vector.multi_reduction <add>, %84, %cst_83 [1] : vector<1x64xf32> to vector<1xf32>
    %86 = vector.shape_cast %85 : vector<1xf32> to vector<1x1xf32>
    %87 = arith.addf %86, %83 : vector<1x1xf32>
    %c0_84 = arith.constant 0 : index
    %c0_85 = arith.constant 0 : index
    %c0_86 = arith.constant 0 : index
    %88 = vector.load %arg4[%c0_84, %c0_85, %c0_86] : memref<1x1x1xf32, #tpu.memory_space<vmem>>, vector<1x1x1xf32>
    %89 = vector.shape_cast %88 : vector<1x1x1xf32> to vector<1x1xf32>
    %90 = vector.shape_cast %87 : vector<1x1xf32> to vector<1x1x1xf32>
    tpu.vector_store %arg4[%c0_84, %c0_85, %c0_86], %90 {strides = array<i32>} : memref<1x1x1xf32, #tpu.memory_space<vmem>>, vector<1x1x1xf32>,
    return
  }
  func.func @transform_0(%arg0: i32) -> (i32, i32, i32) {
    %c0_i32 = arith.constant 0 : i32
    %c0_i32_0 = arith.constant 0 : i32
    %c0_i32_1 = arith.constant 0 : i32
    return %arg0, %c0_i32, %c0_i32_0 : i32, i32, i32
  }
  func.func @transform_1(%arg0: i32) -> (i32, i32) {
    %c0_i32 = arith.constant 0 : i32
    %c0_i32_0 = arith.constant 0 : i32
    %c0_i32_1 = arith.constant 0 : i32
    return %c0_i32, %c0_i32_0 : i32, i32
  }
  func.func @transform_2(%arg0: i32) -> (i32, i32) {
    %c0_i32 = arith.constant 0 : i32
    %c0_i32_0 = arith.constant 0 : i32
    %c0_i32_1 = arith.constant 0 : i32
    return %c0_i32, %c0_i32_0 : i32, i32
  }
  func.func @transform_3(%arg0: i32) -> (i32, i32, i32) {
    %c0_i32 = arith.constant 0 : i32
    %c0_i32_0 = arith.constant 0 : i32
    %c0_i32_1 = arith.constant 0 : i32
    return %arg0, %c0_i32, %c0_i32_0 : i32, i32, i32
  }
}

</mosaic_0001>

<bundles_post_ra>
// kernel: custom-call.1
= control target key start
LH: loop header
LB: loop body
LE: loop exit
PB: predicated region body
PF: predicated region fallthrough
CT: control target
= control target key end

     0   :  { %s51_s0 = inlined_call_operand.hbm [shape: c64[2,1,121], index: 0, kind: input, shape index: {}]   ;;  %s52_s1 = inlined_call_operand.vmem [shape: f32[2,1,121], index: 1, kind: output, shape index: {}]  }
   0x1   :  { %s2_s8 = scalar_lea.hbm %s51_s0, 32 }
   0x2   :  { %3 = vsyncpa [#allocation0], 0  ;;  %s4_s11 = sshll.u32 %s52_s1, 4  ;;  %s5_s11 = int_to_ptr.vmem [resolvable:$true] %s4_s11 }
   0x3   :  { %s20_s12 = scalar_lea.vmem %s5_s11, 32  ;;  %p25_p1 = scmp.lt.s32.totalorder %s5_s11, %s5_s11 }
   0x4   :  { %p21_p0 = scmp.ne.s32.totalorder %s5_s11, %s20_s12  ;;  %p26_p2 = scmp.lt.s32.totalorder %s20_s12, %s20_s12 }
   0x6   :  { %p27_p3 = por %p26_p2, %p25_p1 }
   0x8   :  { %p28_p4 = pnand %p27_p3, %p21_p0 }
   0xa   :  { %31 = shalt.err (!%p28_p4)  }
   0xb   :  { %7 = dma.hbm_to_vmem [thread:$0]  %s2_s8, 32, %s5_s11, [#allocation0] }
   0xc   :  { %33 = dma.done.wait [#allocation0], 32  }
   0xd   :  { %34 = vsyncadd [#allocation0], 4294967264 }
   0xe   :  { %9 = vsyncpa [#allocation0], 1 }

// kernel: custom-call
= control target key start
LH: loop header
LB: loop body
LE: loop exit
PB: predicated region body
PF: predicated region fallthrough
CT: control target
= control target key end

     0   :  { %2 = vsyncpa [#allocation0], 0  ;;  %s47_s0 = inlined_call_operand.hbm [shape: c64[2,1,121], index: 0, kind: input, shape index: {}]   ;;  %s48_s1 = inlined_call_operand.vmem [shape: f32[2,1,121], index: 1, kind: output, shape index: {}]  }
   0x1   :  { %s3_s8 = sshll.u32 %s48_s1, 4  ;;  %s4_s8 = int_to_ptr.vmem [resolvable:$true] %s3_s8 }
   0x2   :  { %s17_s9 = scalar_lea.vmem %s4_s8, 32  ;;  %p22_p1 = scmp.lt.s32.totalorder %s4_s8, %s4_s8 }
   0x3   :  { %p18_p0 = scmp.ne.s32.totalorder %s4_s8, %s17_s9  ;;  %p23_p2 = scmp.lt.s32.totalorder %s17_s9, %s17_s9 }
   0x5   :  { %p24_p3 = por %p23_p2, %p22_p1 }
   0x7   :  { %p25_p4 = pnand %p24_p3, %p18_p0 }
   0x9   :  { %28 = shalt.err (!%p25_p4)  }
   0xa   :  { %6 = dma.hbm_to_vmem [thread:$0]  %s47_s0, 32, %s4_s8, [#allocation0] }
   0xb   :  { %29 = dma.done.wait [#allocation0], 32  }
   0xc   :  { %30 = vsyncadd [#allocation0], 4294967264 }
   0xd   :  { %8 = vsyncpa [#allocation0], 1 }

// kernel: forward.1
= control target key start
LH: loop header
LB: loop body
LE: loop exit
PB: predicated region body
PF: predicated region fallthrough
CT: control target
= control target key end

     0   :  { %s1286_s12 = smov 0   ;;  %s1503_s0 = inlined_call_operand.vmem [shape: f32[2,121,2], index: 0, kind: input, shape index: {}]   ;;  %s1504_s1 = inlined_call_operand.vmem [shape: bf16[400,64], index: 1, kind: input, shape index: {}]   ;;  %s1505_s2 = inlined_call_operand.vmem [shape: f32[8,64], index: 2, kind: input, shape index: {}]   ;;  %s1506_s3 = inlined_call_operand.vmem [shape: f32[2,1,1], index: 3, kind: output, shape index: {}]  }
   0x1 LB: > { %s997_s13 = sadd.s32 4294967295, %s1249_s12   ;;  %p1001_p0 = scmp.ge.s32.totalorder %s1249_s12, 1  ;;  %s1249_s12 = sphi %s1286_s12, %s13_s12  }
   0x2   : > { %p137_p1 = scmp.lt.s32.totalorder %s1249_s12, 3 }
   0x4   : > { %p138_p2 = pnand %p1001_p0, %p137_p1 }
   0x5   : > { %p159_p3 = scmp.lt.s32.totalorder (!%p138_p2), %s997_s13, 1  ;;  %s1251_s18 = smov (!%p138_p2), 4  }
   0x6   : > { %141 = sbr.rel (%p138_p2) target bundleno = 1826 (0x722), region = 32  ;;  %s1252_s19 = smov (!%p138_p2), 2  }
   0x7   : > { %s1253_s20 = smov (!%p138_p2), 6   ;;  %s1254_s21 = smov (!%p138_p2), 8  }
   0x8   : > { %s1255_s22 = smov (!%p138_p2), 10   ;;  %s1256_s23 = smov (!%p138_p2), 12  }
   0x9   : > { %s1257_s26 = smov (!%p138_p2), 14   ;;  %s1258_s29 = smov (!%p138_p2), 16  }
   0xa   : > { %s1259_s30 = smov (!%p138_p2), 18   ;;  %s1260_s4 = smov (!%p138_p2), 20  }
   0xb   : > { %s1508_s13 = smov (!%p159_p3, %s997_s13), 1  ;;  %v1218_v29 = vld [vmem:[%s1504_s1 + $0x8] ss:$0 sps:$4 sm:$0x77]   ;;  %vm419_vm0 = vcmask 1042432   ;;  %v1219_v34 = vld [vmem:[%s1504_s1] sm:$0xff]  }
   0xc   : > { %s1073_s14 = sshll.u32 %s1508_s13, 7  ;;  %1134 = vmatprep.subr.msk.bf16.mxu1 %vm419_vm0, %v1218_v29  ;;  %v421_v31 = vsel %vm419_vm0, %v1218_v29, 0  ;;  %vm353_vm1 = vcmask 15360   ;;  %vm357_vm2 = vcmask 31744   ;;  %vm361_vm3 = vcmask 48128   ;;  %s1264_s9 = smov 64  }
   0xd   : > { %s1300_s17 = scalar_lea.vmem %s1503_s0, %s1073_s14  ;;  %1093 = vmatpush3.bf16.msra.mxu1 %v421_v31  ;;  %vm365_vm4 = vcmask 64512   ;;  %vm369_vm5 = vcmask 80896   ;;  %vm373_vm6 = vcmask 97280   ;;  %vm377_vm7 = vcmask 113664  }
   0xe   : > { %v1009_v0 = vld [vmem:[%s1300_s17 + $0x2] ss:$5 sm:$0xff]  ;;  %v1010_v1 = vld [vmem:[%s1300_s17 + $0x2a] ss:$5 sm:$0xff]  ;;  %v1006_v2 = vld [vmem:[%s1300_s17 + $0x1] ss:$5 sm:$0xff]  ;;  %1094 = vmatprep.subr.bf16.mxu1 %v1219_v34 }
   0xf   : > { %v1163_v3 = vpack.i.bf16 %v1010_v1, %v1009_v0  ;;  %v1007_v4 = vld [vmem:[%s1300_s17 + $0x29] ss:$5 sm:$0xff]  ;;  %v1011_v6 = vld [vmem:[%s1300_s17 + $0x52] ss:$5 sm:$0x7f]  ;;  %vm381_vm8 = vcmask 130048  }
  0x10   : > { %v1158_v5 = vpack.i.bf16 %v1007_v4, %v1006_v2  ;;  %v1008_v7 = vld [vmem:[%s1300_s17 + $0x51] ss:$5 sm:$0x7f]  ;;  %v1012_v8 = vld [vmem:[%s1300_s17 + $0x3] ss:$5 sm:$0xff]  ;;  %vm385_vm9 = vcmask 146432  }
  0x11   : > { %1164 = vrot.lane.b32.xlu1 %v1163_v3, %s1251_s18  ;;  %v1013_v9 = vld [vmem:[%s1300_s17 + $0x2b] ss:$5 sm:$0xff]  ;;  %v1014_v10 = vld [vmem:[%s1300_s17 + $0x53] ss:$5 sm:$0x7f]  ;;  %1095 = vmatpush3.bf16.msra.mxu1 %v1219_v34  ;;  %vm389_vm10 = vcmask 162816  }
  0x12   : > { %1159 = vrot.lane.b32.xlu0 %v1158_v5, %s1252_s19  ;;  %v1168_v11 = vpack.i.bf16 %v1013_v9, %v1012_v8  ;;  %v1015_v12 = vld [vmem:[%s1300_s17 + $0x4] ss:$5 sm:$0xff]  ;;  %v1016_v13 = vld [vmem:[%s1300_s17 + $0x2c] ss:$5 sm:$0xff]  ;;  %v1019_v17 = vld [vmem:[%s1300_s17 + $0x2d] ss:$5 sm:$0xff] }
  0x13   : > { %v1017_v14 = vld [vmem:[%s1300_s17 + $0x54] ss:$5 sm:$0x7f]  ;;  %v1173_v15 = vpack.i.bf16 %v1016_v13, %v1015_v12  ;;  %v1020_v18 = vld [vmem:[%s1300_s17 + $0x55] ss:$5 sm:$0x7f] }
  0x14   : > { %v1018_v16 = vld [vmem:[%s1300_s17 + $0x5] ss:$5 sm:$0xff]  ;;  %v1021_v19 = vld [vmem:[%s1300_s17 + $0x6] ss:$5 sm:$0xff]  ;;  %v1022_v21 = vld [vmem:[%s1300_s17 + $0x2e] ss:$5 sm:$0xff] }
  0x15   : > { %252 = vrot.lane.b32.xlu1 %v1011_v6, %s1251_s18  ;;  %v1178_v20 = vpack.i.bf16 %v1019_v17, %v1018_v16  ;;  %v1023_v22 = vld [vmem:[%s1300_s17 + $0x56] ss:$5 sm:$0x7f]  ;;  %v1183_v24 = vpack.i.bf16 %v1022_v21, %v1021_v19  ;;  %v1026_v26 = vld [vmem:[%s1300_s17 + $0x57] ss:$5 sm:$0x7f] }
  0x16   : > { %240 = vrot.lane.b32.xlu0 %v1008_v7, %s1252_s19  ;;  %v1024_v23 = vld [vmem:[%s1300_s17 + $0x7] ss:$5 sm:$0xff]  ;;  %v1025_v25 = vld [vmem:[%s1300_s17 + $0x2f] ss:$5 sm:$0xff]  ;;  %v1028_v28 = vld [vmem:[%s1300_s17 + $0x30] ss:$5 sm:$0xff] }
  0x17   : > { %v1027_v27 = vld [vmem:[%s1300_s17 + $0x8] ss:$5 sm:$0xff]  ;;  %v1188_v30 = vpack.i.bf16 %v1025_v25, %v1024_v23  ;;  %v1029_v32 = vld [vmem:[%s1300_s17 + $0x58] ss:$5 sm:$0x7f]  ;;  %vm412_vm11 = vcmask 179200  }
  0x18   : > { %v1030_v33 = vld [vmem:[%s1300_s17 + $0x9] ss:$5 sm:$0xff]  ;;  %v1193_v35 = vpack.i.bf16 %v1028_v28, %v1027_v27  ;;  %v1031_v36 = vld [vmem:[%s1300_s17 + $0x31] ss:$5 sm:$0xff]  ;;  %v1034_v40 = vld [vmem:[%s1300_s17 + $0x32] ss:$5 sm:$0xff] }
  0x19   : > { %264 = vrot.lane.b32.xlu1 %v1014_v10, %s1253_s20  ;;  %v1032_v37 = vld [vmem:[%s1300_s17 + $0x59] ss:$5 sm:$0x7f]  ;;  %v1198_v38 = vpack.i.bf16 %v1031_v36, %v1030_v33  ;;  %v1035_v41 = vld [vmem:[%s1300_s17 + $0x5a] ss:$5 sm:$0x7f] }
  0x1a   : > { %1169 = vrot.lane.b32.xlu0 %v1168_v11, %s1253_s20  ;;  %v1033_v39 = vld [vmem:[%s1300_s17 + $0xa] ss:$5 sm:$0xff]  ;;  %v1005_v58 = vld [vmem:[%s1300_s17 + $0x50] ss:$5 sm:$0x7f]  ;;  %vm531_vm12 = vcmask 1043456  }
  0x1b   : > { %v1203_v42 = vpack.i.bf16 %v1034_v40, %v1033_v39  ;;  %v168_v57 = vld [vmem:[%s1300_s17] ss:$5 sm:$0xff]  ;;  %v1004_v60 = vld [vmem:[%s1300_s17 + $0x28] ss:$5 sm:$0xff]  ;;  %vm476_vm13 = vcmask 63488   ;;  %vm1262_vm14 = vmmov 0  }
  0x1c   : > { %vm527_vm15 = vcmask 195584   ;;  %vm579_vm0 = vcmask 124928  }
  0x1d   : > { %276 = vrot.lane.b32.xlu1 %v1017_v14, %s1254_s21 }
  0x1e   : > { %1174 = vrot.lane.b32.xlu0 %v1173_v15, %s1254_s21 }
  0x21   : > { %288 = vrot.lane.b32.xlu1 %v1020_v18, %s1255_s22 }
  0x22   : > { %1179 = vrot.lane.b32.xlu0 %v1178_v20, %s1255_s22 }
  0x25   : > { %300 = vrot.lane.b32.xlu1 %v1023_v22, %s1256_s23 }
  0x26   : > { %1184 = vrot.lane.b32.xlu0 %v1183_v24, %s1256_s23 }
  0x29   : > { %312 = vrot.lane.b32.xlu1 %v1026_v26, %s1257_s26 }
  0x2a   : > { %1189 = vrot.lane.b32.xlu0 %v1188_v30, %s1257_s26 }
  0x2d   : > { %324 = vrot.lane.b32.xlu1 %v1029_v32, %s1258_s29 }
  0x2e   : > { %1194 = vrot.lane.b32.xlu0 %v1193_v35, %s1258_s29 }
  0x31   : > { %336 = vrot.lane.b32.xlu1 %v1032_v37, %s1259_s30 }
  0x32   : > { %1199 = vrot.lane.b32.xlu0 %v1198_v38, %s1259_s30 }
  0x35   : > { %348 = vrot.lane.b32.xlu1 %v1035_v41, %s1260_s4 }
  0x36   : > { %1204 = vrot.lane.b32.xlu0 %v1203_v42, %s1260_s4 }
  0x83   : > { %v1165_v43 = vpop.permute.xlu1 %1164 }
  0x84   : > { %v1160_v44 = vpop.permute.xlu0 %1159  ;;  %v1166_v62 = vunpack.i.l.bf16 %v1165_v43  ;;  %v1167_v63 = vunpack.i.h.bf16 %v1165_v43 }
  0x85   : > { %v1161_v55 = vunpack.i.l.bf16 %v1160_v44  ;;  %v1162_v56 = vunpack.i.h.bf16 %v1160_v44 }
  0x87   : > { %v253_v45 = vpop.permute.xlu1 %252  ;;  %v354_v0 = vsel %vm353_vm1, %v168_v57, %v1161_v55  ;;  %v355_v3 = vsel %vm353_vm1, %v1004_v60, %v1162_v56  ;;  %v1261_v55 = vmov 0.0   ;;  %v1036_v57 = vld [vmem:[%s1505_s2] ss:$0 sm:$0xff] }
  0x88   : > { %v241_v46 = vpop.permute.xlu0 %240  ;;  %v358_v10 = vsel %vm357_vm2, %v354_v0, %v1166_v62  ;;  %v359_v14 = vsel %vm357_vm2, %v355_v3, %v1167_v63  ;;  %1100 = vmatprep.subr.bf16.mxu1 %v1261_v55 }
  0x89   : > { %v356_v1 = vsel %vm353_vm1, %v1005_v58, %v241_v46  ;;  %vm595_vm1 = vcmask 261120  }
  0x8a   : > { %v360_v9 = vsel %vm357_vm2, %v356_v1, %v253_v45  ;;  %vm627_vm2 = vcmask 392192  }
  0x8b   : > { %v265_v47 = vpop.permute.xlu1 %264 }
  0x8c   : > { %v1170_v48 = vpop.permute.xlu0 %1169  ;;  %v364_v13 = vsel %vm361_vm3, %v360_v9, %v265_v47 }
  0x8d   : > { %v1171_v2 = vunpack.i.l.bf16 %v1170_v48  ;;  %v1172_v4 = vunpack.i.h.bf16 %v1170_v48 }
  0x8f   : > { %v277_v49 = vpop.permute.xlu1 %276  ;;  %v362_v15 = vsel %vm361_vm3, %v358_v10, %v1171_v2  ;;  %v363_v17 = vsel %vm361_vm3, %v359_v14, %v1172_v4  ;;  %v1221_v4 = vld [vmem:[%s1504_s1 + $0x10] sm:$0xff]   ;;  %vm672_vm3 = vcmask 258048  }
  0x90   : > { %v1175_v50 = vpop.permute.xlu0 %1174  ;;  %v368_v18 = vsel %vm365_vm4, %v364_v13, %v277_v49 }
  0x91   : > { %v1177_v6 = vunpack.i.h.bf16 %v1175_v50  ;;  %v1176_v7 = vunpack.i.l.bf16 %v1175_v50 }
  0x93   : > { %v289_v51 = vpop.permute.xlu1 %288  ;;  %v366_v22 = vsel %vm365_vm4, %v362_v15, %v1176_v7  ;;  %v367_v23 = vsel %vm365_vm4, %v363_v17, %v1177_v6 }
  0x94   : > { %v1180_v52 = vpop.permute.xlu0 %1179  ;;  %v372_v27 = vsel %vm369_vm5, %v368_v18, %v289_v51 }
  0x95   : > { %v1182_v11 = vunpack.i.h.bf16 %v1180_v52  ;;  %v1181_v12 = vunpack.i.l.bf16 %v1180_v52 }
  0x97   : > { %v301_v53 = vpop.permute.xlu1 %300  ;;  %v370_v28 = vsel %vm369_vm5, %v366_v22, %v1181_v12  ;;  %v371_v29 = vsel %vm369_vm5, %v367_v23, %v1182_v11  ;;  %vm742_vm5 = vcmask 785408  }
  0x98   : > { %v1185_v54 = vpop.permute.xlu0 %1184  ;;  %v376_v31 = vsel %vm373_vm6, %v372_v27, %v301_v53 }
  0x99   : > { %v1186_v16 = vunpack.i.l.bf16 %v1185_v54  ;;  %v1187_v19 = vunpack.i.h.bf16 %v1185_v54  ;;  %v1220_v54 = vld [vmem:[%s1504_s1 + $0x18] ss:$0 sps:$4 sm:$0xff]  }
  0x9a   : > { %v533_v56 = vsel %vm531_vm12, %v1220_v54, 0 }
  0x9b   : > { %v313_v59 = vpop.permute.xlu1 %312  ;;  %v374_v32 = vsel %vm373_vm6, %v370_v28, %v1186_v16  ;;  %v375_v35 = vsel %vm373_vm6, %v371_v29, %v1187_v19  ;;  %vm787_vm6 = vcmask 518144  }
  0x9c   : > { %v1190_v61 = vpop.permute.xlu0 %1189  ;;  %v380_v36 = vsel %vm377_vm7, %v376_v31, %v313_v59 }
  0x9d   : > { %v1191_v20 = vunpack.i.l.bf16 %v1190_v61  ;;  %v1192_v24 = vunpack.i.h.bf16 %v1190_v61 }
  0x9f   : > { %v325_v5 = vpop.permute.xlu1 %324  ;;  %v378_v37 = vsel %vm377_vm7, %v374_v32, %v1191_v20  ;;  %v379_v39 = vsel %vm377_vm7, %v375_v35, %v1192_v24  ;;  %v1222_v24 = vld [vmem:[%s1504_s1 + $0x30] sm:$0xff]   ;;  %v1224_v32 = vld [vmem:[%s1504_s1 + $0x20] sm:$0xff]   ;;  %vm943_vm7 = vcmask 516096  }
  0xa0   : > { %v1195_v8 = vpop.permute.xlu0 %1194  ;;  %v384_v40 = vsel %vm381_vm8, %v380_v36, %v325_v5 }
  0xa1   : > { %v1196_v25 = vunpack.i.l.bf16 %v1195_v8  ;;  %v1197_v30 = vunpack.i.h.bf16 %v1195_v8 }
  0xa3   : > { %v337_v21 = vpop.permute.xlu1 %336  ;;  %v382_v41 = vsel %vm381_vm8, %v378_v37, %v1196_v25  ;;  %v383_v43 = vsel %vm381_vm8, %v379_v39, %v1197_v30  ;;  %v1223_v25 = vld [vmem:[%s1504_s1 + $0x28] sm:$0xff]  }
  0xa4   : > { %v1200_v26 = vpop.permute.xlu0 %1199  ;;  %v388_v44 = vsel %vm385_vm9, %v384_v40, %v337_v21 }
  0xa5   : > { %v1202_v33 = vunpack.i.h.bf16 %v1200_v26  ;;  %v1201_v34 = vunpack.i.l.bf16 %v1200_v26  ;;  %v1041_v26 = vld [vmem:[%s1505_s2 + $0x1] ss:$0 sm:$0xff] }
  0xa7   : > { %v349_v38 = vpop.permute.xlu1 %348  ;;  %v386_v48 = vsel %vm385_vm9, %v382_v41, %v1201_v34  ;;  %v387_v49 = vsel %vm385_vm9, %v383_v43, %v1202_v33 }
  0xa8   : > { %v1205_v42 = vpop.permute.xlu0 %1204  ;;  %v392_v47 = vsel %vm389_vm10, %v388_v44, %v349_v38  ;;  %v1225_v44 = vld [vmem:[%s1504_s1 + $0x60] sm:$0xff]  }
  0xa9   : > { %v1207_v45 = vunpack.i.h.bf16 %v1205_v42  ;;  %v1206_v46 = vunpack.i.l.bf16 %v1205_v42  ;;  %v394_v53 = vpack.c.bf16 %v392_v47, %v392_v47  ;;  %v1228_v47 = vld [vmem:[%s1504_s1 + $0x48] sm:$0xff]  }
  0xab   : > { %v390_v50 = vsel %vm389_vm10, %v386_v48, %v1206_v46  ;;  %v391_v51 = vsel %vm389_vm10, %v387_v49, %v1207_v45  ;;  %v1226_v45 = vld [vmem:[%s1504_s1 + $0x58] sm:$0xff]   ;;  %v1227_v46 = vld [vmem:[%s1504_s1 + $0x50] sm:$0xff]   ;;  %v1229_v48 = vld [vmem:[%s1504_s1 + $0x40] sm:$0xff]  }
  0xac   : > { %v393_v52 = vpack.c.bf16 %v391_v51, %v390_v50  ;;  %v1045_v49 = vld [vmem:[%s1505_s2 + $0x2] ss:$0 sm:$0xff]  ;;  %v1230_v51 = vld [vmem:[%s1504_s1 + $0x38] sm:$0xff]  }
  0xae   : > { %1096 = vmatprep.mubr.msk.bf16.mxu1 %vm412_vm11, %v393_v52 }
  0xaf   : > { %1097 = vmatmul.mubr.msk.bf16.vlgmr.msra.gmra.mxu1 %vm412_vm11, %v394_v53 }
  0xb0   : > { %1101 = vmatpush3.bf16.msra.mxu1 %v533_v56  ;;  %1104 = vmatprep.mubr.msk.bf16.mxu1 %vm1262_vm14, %v1261_v55 }
  0xb1   : > { %1102 = vmatprep.subr.bf16.mxu1 %v1261_v55 }
  0xb4   : > { %1103 = vmatpush3.bf16.msra.mxu1 %v1221_v4  ;;  %v1233_v4 = vld [vmem:[%s1504_s1 + $0x90] sm:$0xff]  }
  0xb5   : > { %1108 = vmatprep.subr.bf16.mxu1 %v1261_v55 }
 0x16f   : > { %v1098_v58 = vpop.f32.mrf.mxu1 }
 0x170   : > { %v466_v59 = vadd.f32 %v1098_v58, %v1036_v57 }
 0x171   : > { %v457_v60 = vpop.f32.mrf.mxu1 }
 0x172   : > { %v473_v61 = vmax.f32 %v466_v59, 0.0  ;;  %v458_v62 = vadd.f32 %v1036_v57, %v457_v60 }
 0x173   : > { %v1099_v63 = vpop.f32.mrf.mxu1 }
 0x174   : > { %477 = vst.msk [vmem:[#allocation2 + $0x10] sm:$0x7f] %vm476_vm13, %v473_v61  ;;  %v471_v0 = vmax.f32 %v458_v62, 0.0 }
 0x175   : > { %v460_v1 = vpop.f32.mrf.mxu1 }
 0x176   : > { %474 = vst.msk [vmem:[#allocation2] sm:$0xff] %vm365_vm4, %v471_v0  ;;  %v461_v2 = vadd.f32 %v1036_v57, %v460_v1  ;;  %v1231_v1 = vld [vmem:[%s1504_s1 + $0xa0] sm:$0xff]  }
 0x178   : > { %v472_v3 = vmax.f32 %v461_v2, 0.0  ;;  %v1265_v2 = vmov 0  }
 0x179   : > { %899 = vmatprep.subr.bf16.mxu0 %v1265_v2 }
 0x17a   : > { %475 = vst.msk [vmem:[#allocation2 + $0x8] sm:$0xff] %vm365_vm4, %v472_v3  ;;  %900 = vmatpush1.bf16.msra.mxu0 %v1231_v1  ;;  %v1232_v3 = vld [vmem:[%s1504_s1 + $0x98] sm:$0xff]  }
 0x17b   : > { %v488_v5 = vld [vmem:[#allocation2 + $0x12] ss:$2 sm:$0x7]  ;;  %v484_v6 = vld [vmem:[#allocation2 + $0x11] ss:$2 sm:$0x7]  ;;  %901 = vmatprep.subr.bf16.mxu0 %v1265_v2 }
 0x17c   : > { %v480_v17 = vld [vmem:[#allocation2 + $0x10] ss:$2 sm:$0x7] }
 0x17e   : > { %902 = vmatpush1.bf16.msra.mxu0 %v1232_v3 }
 0x17f   : > { %903 = vmatprep.subr.bf16.mxu0 %v1265_v2 }
 0x181   : > { %v486_v7 = vld [vmem:[#allocation2 + $0x2] ss:$2 sm:$0xff]  ;;  %v482_v8 = vld [vmem:[#allocation2 + $0x1] ss:$2 sm:$0xff] }
 0x182   : > { %v1213_v9 = vpack.i.bf16 %v488_v5, %v486_v7  ;;  %v1208_v10 = vpack.i.bf16 %v484_v6, %v482_v8  ;;  %v478_v18 = vld [vmem:[#allocation2] ss:$2 sm:$0xff]  ;;  %904 = vmatpush1.bf16.msra.mxu0 %v1233_v4  ;;  %v1236_v7 = vld [vmem:[%s1504_s1 + $0x78] sm:$0xff]   ;;  %v1237_v8 = vld [vmem:[%s1504_s1 + $0x70] sm:$0xff]  }
 0x183   : > { %v1234_v5 = vld [vmem:[%s1504_s1 + $0x88] sm:$0xff]   ;;  %905 = vmatprep.subr.bf16.mxu0 %v1265_v2  ;;  %v1235_v6 = vld [vmem:[%s1504_s1 + $0x80] sm:$0xff]  }
 0x184   : > { %1214 = vrot.lane.b32.xlu1 %v1213_v9, %s1258_s29  ;;  %1209 = vrot.lane.b32.xlu0 %v1208_v10, %s1254_s21  ;;  %s1263_s21 = smov 32   ;;  %v1238_v9 = vld [vmem:[%s1504_s1 + $0x68] sm:$0xff]   ;;  %v1239_v10 = vld [vmem:[%s1504_s1 + $0xc0] sm:$0xff]  }
 0x186   : > { %906 = vmatpush1.bf16.msra.mxu0 %v1234_v5 }
 0x187   : > { %907 = vmatprep.subr.bf16.mxu0 %v1265_v2 }
 0x18a   : > { %908 = vmatpush1.bf16.msra.mxu0 %v1235_v6 }
 0x18b   : > { %909 = vmatprep.subr.bf16.mxu0 %v1265_v2 }
 0x18e   : > { %910 = vmatpush1.bf16.msra.mxu0 %v1236_v7 }
 0x18f   : > { %911 = vmatprep.subr.bf16.mxu0 %v1265_v2 }
 0x192   : > { %912 = vmatpush1.bf16.msra.mxu0 %v1237_v8 }
 0x193   : > { %913 = vmatprep.subr.bf16.mxu0 %v1265_v2 }
 0x196   : > { %914 = vmatpush1.bf16.msra.mxu0 %v1238_v9 }
 0x197   : > { %923 = vmatprep.subr.bf16.mxu0 %v1265_v2 }
 0x19a   : > { %924 = vmatpush2.bf16.msra.mxu0 %v1239_v10 }
 0x19b   : > { %925 = vmatprep.subr.bf16.mxu0 %v1265_v2 }
 0x1f6   : > { %v1215_v11 = vpop.permute.xlu1 %1214  ;;  %v1210_v12 = vpop.permute.xlu0 %1209 }
 0x1f7   : > { %v1217_v13 = vunpack.i.h.bf16 %v1215_v11  ;;  %v1216_v14 = vunpack.i.l.bf16 %v1215_v11  ;;  %v1212_v15 = vunpack.i.h.bf16 %v1210_v12  ;;  %v1211_v16 = vunpack.i.l.bf16 %v1210_v12  ;;  %v1240_v11 = vld [vmem:[%s1504_s1 + $0xb8] sm:$0xff]   ;;  %v1241_v12 = vld [vmem:[%s1504_s1 + $0xb0] sm:$0xff]  }
 0x1f8   : > { %926 = vmatpush2.bf16.msra.mxu0 %v1240_v11 }
 0x1f9   : > { %v506_v19 = vsel %vm365_vm4, %v480_v17, %v1212_v15  ;;  %v505_v20 = vsel %vm365_vm4, %v478_v18, %v1211_v16  ;;  %vm686_vm4 = vcmask 523264   ;;  %927 = vmatprep.subr.bf16.mxu0 %v1265_v2 }
 0x1fa   : > { %v508_v21 = vsel %vm381_vm8, %v506_v19, %v1217_v13  ;;  %v507_v22 = vsel %vm381_vm8, %v505_v20, %v1216_v14  ;;  %v1050_v13 = vld [vmem:[%s1505_s2 + $0x3] ss:$0 sm:$0xff]  ;;  %v1242_v14 = vld [vmem:[%s1504_s1 + $0xa8] sm:$0xff]  }
 0x1fb   : > { %v509_v23 = vpack.c.bf16 %v508_v21, %v507_v22 }
 0x1fc   : > { %928 = vmatpush2.bf16.msra.mxu0 %v1241_v12 }
 0x1fd   : > { %1105 = vmatmul.mubr.msk.bf16.vlgmr.msra.gmra.mxu1 %vm527_vm15, %v509_v23  ;;  %929 = vmatprep.subr.bf16.mxu0 %v1265_v2 }
 0x1fe   : > { %1114 = vmatprep.mubr.msk.bf16.mxu1 %vm1262_vm14, %v1261_v55  ;;  %1109 = vmatpush3.bf16.msra.mxu1 %v1222_v24 }
 0x1ff   : > { %1110 = vmatprep.subr.bf16.mxu1 %v1261_v55 }
 0x200   : > { %930 = vmatpush2.bf16.msra.mxu0 %v1242_v14 }
 0x202   : > { %1111 = vmatpush3.bf16.msra.mxu1 %v1223_v25 }
 0x203   : > { %1112 = vmatprep.subr.bf16.mxu1 %v1261_v55 }
 0x206   : > { %1113 = vmatpush3.bf16.msra.mxu1 %v1224_v32  ;;  %v940_v32 = vld [vmem:[%s1505_s2 + $0x5] sm:$0x1] }
 0x207   : > { %1118 = vmatprep.subr.bf16.mxu1 %v1261_v55 }
 0x2bd   : > { %v569_v27 = vpop.f32.mrf.mxu1 }
 0x2be   : > { %v570_v28 = vadd.f32 %v1041_v26, %v569_v27 }
 0x2bf   : > { %v1106_v29 = vpop.f32.mrf.mxu1 }
 0x2c0   : > { %v576_v30 = vmax.f32 %v570_v28, 0.0  ;;  %v823_v28 = vld [vmem:[%s1505_s2 + $0x4] sm:$0x1] }
 0x2c1   : > { %v572_v31 = vpop.f32.mrf.mxu1 }
 0x2c2   : > { %578 = vst.msk [vmem:[#allocation3] sm:$0xff] %vm381_vm8, %v576_v30  ;;  %v573_v33 = vadd.f32 %v1041_v26, %v572_v31 }
 0x2c3   : > { %v1107_v34 = vpop.f32.mrf.mxu1 }
 0x2c4   : > { %v577_v35 = vmax.f32 %v573_v33, 0.0 }
 0x2c6   : > { %580 = vst.msk [vmem:[#allocation3 + $0x8] sm:$0x7] %vm579_vm0, %v577_v35 }
 0x2cd   : > { %v585_v36 = vld [vmem:[#allocation3 + $0x2] ss:$2 sm:$0x1f]  ;;  %v583_v37 = vld [vmem:[#allocation3 + $0x1] ss:$2 sm:$0x1f] }
 0x2ce   : > { %591 = vrot.lane.b32.xlu1 %v585_v36, %s1263_s21  ;;  %587 = vrot.lane.b32.xlu0 %v583_v37, %s1258_s29  ;;  %v581_v40 = vld [vmem:[#allocation3] ss:$2 sm:$0x1f] }
 0x340   : > { %v592_v38 = vpop.permute.xlu1 %591  ;;  %v588_v39 = vpop.permute.xlu0 %587 }
 0x341   : > { %v594_v41 = vsel %vm381_vm8, %v581_v40, %v588_v39  ;;  %vm948_vm8 = vcmask 0  }
 0x342   : > { %v596_v42 = vsel %vm595_vm1, %v594_v41, %v592_v38  ;;  %v941_v38 = vld [vmem:[%s1505_s2 + $0x6] sm:$0x1] }
 0x343   : > { %v597_v43 = vpack.c.bf16 %v596_v42, %v596_v42 }
 0x345   : > { %1115 = vmatmul.mubr.msk.bf16.vlgmr.msra.gmra.mxu1 %vm627_vm2, %v597_v43 }
 0x346   : > { %1130 = vmatprep.mubr.msk.bf16.mxu1 %vm1262_vm14, %v1261_v55  ;;  %1119 = vmatpush3.bf16.msra.mxu1 %v1225_v44 }
 0x347   : > { %1120 = vmatprep.subr.bf16.mxu1 %v1261_v55 }
 0x34a   : > { %1121 = vmatpush3.bf16.msra.mxu1 %v1226_v45 }
 0x34b   : > { %1122 = vmatprep.subr.bf16.mxu1 %v1261_v55 }
 0x34e   : > { %1123 = vmatpush3.bf16.msra.mxu1 %v1227_v46 }
 0x34f   : > { %1124 = vmatprep.subr.bf16.mxu1 %v1261_v55 }
 0x352   : > { %1125 = vmatpush3.bf16.msra.mxu1 %v1228_v47 }
 0x353   : > { %1126 = vmatprep.subr.bf16.mxu1 %v1261_v55 }
 0x356   : > { %1127 = vmatpush3.bf16.msra.mxu1 %v1229_v48 }
 0x357   : > { %1128 = vmatprep.subr.bf16.mxu1 %v1261_v55 }
 0x35a   : > { %1129 = vmatpush3.bf16.msra.mxu1 %v1230_v51 }
 0x405   : > { %v665_v50 = vpop.f32.mrf.mxu1 }
 0x406   : > { %v666_v52 = vadd.f32 %v1045_v49, %v665_v50 }
 0x407   : > { %v1116_v53 = vpop.f32.mrf.mxu1 }
 0x408   : > { %v671_v54 = vmax.f32 %v666_v52, 0.0 }
 0x409   : > { %v668_v56 = vpop.f32.mrf.mxu1 }
 0x40a   : > { %673 = vst.msk [vmem:[#allocation4] sm:$0x1f] %vm672_vm3, %v671_v54 }
 0x40b   : > { %v1117_v57 = vpop.f32.mrf.mxu1 }
 0x411   : > { %v676_v58 = vld [vmem:[#allocation4 + $0x2] sm:$0x7] }
 0x412   : > { %v675_v59 = vld [vmem:[#allocation4 + $0x1] sm:$0x7]  ;;  %682 = vrot.lane.b32.xlu1 %v676_v58, %s1264_s9 }
 0x413   : > { %678 = vrot.lane.b32.xlu0 %v675_v59, %s1263_s21  ;;  %v674_v61 = vld [vmem:[#allocation4] sm:$0x7]  ;;  %s166_s21 = scalar_lea.vmem %s1506_s3, %s1508_s13 }
 0x484   : > { %v683_v55 = vpop.permute.xlu1 %682 }
 0x485   : > { %v679_v60 = vpop.permute.xlu0 %678 }
 0x486   : > { %v685_v62 = vsel %vm595_vm1, %v674_v61, %v679_v60 }
 0x487   : > { %v687_v63 = vsel %vm686_vm4, %v685_v62, %v683_v55 }
 0x488   : > { %v688_v0 = vpack.c.bf16 %v687_v63, %v687_v63 }
 0x48a   : > { %1131 = vmatmul.mubr.msk.bf16.vlgmr.msra.gmra.mxu1 %vm742_vm5, %v688_v0 }
 0x54a   : > { %v780_v15 = vpop.f32.mrf.mxu1 }
 0x54b   : > { %v781_v16 = vadd.f32 %v1050_v13, %v780_v15 }
 0x54c   : > { %v1132_v17 = vpop.f32.mrf.mxu1 }
 0x54d   : > { %v786_v18 = vmax.f32 %v781_v16, 0.0 }
 0x54e   : > { %v783_v19 = vpop.f32.mrf.mxu1 }
 0x54f   : > { %788 = vst.msk [vmem:[#allocation5] sm:$0x7] %vm787_vm6, %v786_v18 }
 0x550   : > { %v1133_v20 = vpop.f32.mrf.mxu1 }
 0x556   : > { %v790_v21 = vld [vmem:[#allocation5 + $0x1] sm:$0x1]  ;;  %v791_v22 = vld [vmem:[#allocation5 + $0x2] sm:$0x1]  ;;  %v789_v25 = vld [vmem:[#allocation5] sm:$0x1] }
 0x557   : > { %793 = vrot.lane.b32.xlu0 %v790_v21, %s1264_s9  ;;  %v798_v23 = vpack.c.bf16 %v791_v22, %v791_v22 }
 0x559   : > { %1070 = vmatprep.mubr.msk.bf16.mxu0 %vm686_vm4, %v798_v23 }
 0x5c9   : > { %v794_v24 = vpop.permute.xlu0 %793 }
 0x5ca   : > { %v796_v26 = vsel %vm686_vm4, %v789_v25, %v794_v24 }
 0x5cb   : > { %v797_v27 = vpack.c.bf16 %v796_v26, %v796_v26 }
 0x5cd   : > { %932 = vmatmul.mubr.bf16.vlgmr.msra.gmra.mxu0 %v797_v27 }
 0x68d   : > { %v933_v29 = vpop.f32.mrf.mxu0 }
 0x68e   : > { %v934_v30 = vadd.f32 %v933_v29, %v823_v28 }
 0x68f   : > { %v935_v31 = vpop.f32.mrf.mxu0 }
 0x690   : > { %v939_v33 = vmax.f32 %v934_v30, 0.0 }
 0x691   : > { %v936_v34 = vpop.f32.mrf.mxu0 }
 0x692   : > { %v942_v35 = vmul.f32 %v940_v32, %v939_v33 }
 0x693   : > { %v937_v36 = vpop.f32.mrf.mxu0 }
 0x694   : > { %v944_v37 = vsel %vm943_vm7, %v942_v35, 0.0 }
 0x695   : > { %945 = vadd.xlane.f32.xlu1 %v944_v37 }
 0x71e   : > { %v946_v39 = vpop.xlane.xlu1 %945 }
 0x71f   : > { %v947_v40 = vadd.f32 %v946_v39, %v941_v38 }
 0x721   : > { %949 = vst.msk [vmem:[%s166_s21] sm:$0x1] %vm948_vm8, %v947_v40 }
 0x722 PF: > { %s13_s12 = sadd.s32 1, %s1249_s12  }
 0x723   : > { %p10_p4 = scmp.ge.s32.totalorder %s13_s12, 4  }
 0x725   :  { %12 = sbr.rel (!%p10_p4) target bundleno = 1 (0x1), region = 101 }

</bundles_post_ra>
